<compile_context>
chip_gen: v7x
topology: tpu7x:2x2x1
jax: 0.10.0
libtpu: 0.0.40
codegen_flags: <defaults>
</compile_context>

<pallas_src>
import functools

import jax
import jax.numpy as jnp
from jax import lax
from jax.experimental import pallas as pl
from jax.experimental.pallas import tpu as pltpu


def _round_up(n, m):
    return ((n + m - 1) // m) * m


# ----------------------------------------------------------------------------
# Kernel
# ----------------------------------------------------------------------------
def _vae_kernel(x_ref, eps_ref,
                w1_ref, b1_ref, w23_ref, b23_ref,
                w4_ref, b4_ref, w5_ref, b5_ref,
                z_ref, xhat_ref, loss_ref,
                *, true_b, true_d, zp):
    f32 = jnp.float32
    x = x_ref[...].astype(f32)        # (TB, Dp)  f32 target for BCE
    eps = eps_ref[...].astype(f32)    # (TB, Zp)

    mm_dtype = w1_ref.dtype           # bf16 weights, f32 accumulation

    # ---- encoder ----  (weights stored [in, out]: no in-kernel transpose)
    h = jnp.dot(x.astype(mm_dtype), w1_ref[...],
                preferred_element_type=f32) + b1_ref[...]
    h = jnp.maximum(h, 0.0)

    # Fused mu/logvar head: one MXU pass over h, split at a 128-aligned column.
    ml = jnp.dot(h.astype(mm_dtype), w23_ref[...],
                 preferred_element_type=f32) + b23_ref[...]
    mu = ml[:, :zp]
    logvar = ml[:, zp:]

    # ---- reparameterize ----
    std = jnp.exp(0.5 * logvar)
    z = mu + eps * std

    # ---- decoder ----
    h2 = jnp.dot(z.astype(mm_dtype), w4_ref[...],
                 preferred_element_type=f32) + b4_ref[...]
    h2 = jnp.maximum(h2, 0.0)
    logits = jnp.dot(h2.astype(mm_dtype), w5_ref[...],
                     preferred_element_type=f32) + b5_ref[...]
    x_hat = jax.nn.sigmoid(logits)

    # ---- masks: ignore zero-padded batch rows / input columns in the sums ----
    tb, dp = x.shape
    base = pl.program_id(0) * tb
    row_ids = base + lax.broadcasted_iota(jnp.int32, (tb, 1), 0)
    row_valid = (row_ids < true_b).astype(f32)                        # (TB, 1)
    col_ids = lax.broadcasted_iota(jnp.int32, (1, dp), 1)
    col_valid = (col_ids < true_d).astype(f32)                        # (1, Dp)

    # ---- losses ----
    # BCE(sigmoid(l), x), reduction='sum', stable with-logits form.  Reuse the
    # sigmoid already computed for x_hat:  log(1+exp(-|l|)) = -log(max(s, 1-s)).
    bce_el = (jnp.maximum(logits, 0.0) - logits * x
              - jnp.log(jnp.maximum(x_hat, 1.0 - x_hat)))
    bce = jnp.sum((bce_el * col_valid) * row_valid)
    # KL( N(mu, std^2) || N(0,1) ); reuse std*std instead of exp(logvar).
    kl_el = -0.5 * (1.0 + logvar - mu * mu - std * std)
    kl = jnp.sum(kl_el * row_valid)

    z_ref[...] = z.astype(z_ref.dtype)
    xhat_ref[...] = x_hat.astype(xhat_ref.dtype)
    loss_ref[...] = jnp.broadcast_to(bce + kl, loss_ref.shape).astype(loss_ref.dtype)


# ----------------------------------------------------------------------------
# Wrapper
# ----------------------------------------------------------------------------
def vae_forward(x, eps, prepared, *, block_b=128):
    """Fused VAE forward.  `prepared` comes from prepare_vae_params().

    Returns (z, x_hat, loss) with loss a scalar float32 (BCE-sum + KL)."""
    B, D = x.shape
    Z = eps.shape[1]
    Dp = prepared["w1"].shape[0]      # padded input dim
    Hp = prepared["w1"].shape[1]      # padded hidden dim
    Zp = prepared["w23"].shape[1] // 2  # padded latent dim
    w_bytes = jnp.dtype(prepared["w1"].dtype).itemsize

    # Batch tile: start from block_b and shrink until the double-buffered VMEM
    # footprint fits well inside v7x's 64 MiB VMEM (also fine on v5e/v6e).
    def vmem_estimate(tb):
        io_in = 2 * 4 * tb * (Dp + Zp)                       # x, eps (x2 buffers)
        io_out = 2 * 4 * (tb * (Dp + Zp) + 8 * 128)          # z, x_hat, partial loss
        wgt = 2 * w_bytes * (Dp * Hp + Hp * 2 * Zp + Zp * Hp + Hp * Dp)
        bias = 2 * 4 * (2 * Hp + 2 * Zp + Dp)
        interm = 4 * tb * (2 * Hp + 4 * Zp + 2 * Dp)         # f32 intermediates
        return io_in + io_out + wgt + bias + interm

    VMEM_BUDGET = 48 * 1024 * 1024
    tb = max(8, min(block_b, _round_up(B, 8)) // 8 * 8)
    while tb > 8 and vmem_estimate(tb) > VMEM_BUDGET:
        tb = max(8, (tb // 2) // 8 * 8)

    Bp = _round_up(B, tb)
    grid = (Bp // tb,)

    # Zero-pad activations to lane/sublane-aligned shapes (sliced off at the end).
    xp = jnp.zeros((Bp, Dp), jnp.float32).at[:B, :D].set(x.astype(jnp.float32))
    ep = jnp.zeros((Bp, Zp), jnp.float32).at[:B, :Z].set(eps.astype(jnp.float32))

    kernel = functools.partial(_vae_kernel, true_b=B, true_d=D, zp=Zp)

    def resident(shape):
        return pl.BlockSpec(shape, lambda i, _s=shape: (0,) * len(_s))

    def batched(shape):
        return pl.BlockSpec(shape, lambda i, _s=shape: (i,) + (0,) * (len(_s) - 1))

    in_specs = [
        batched((tb, Dp)),                            # x
        batched((tb, Zp)),                            # eps
        resident((Dp, Hp)), resident((1, Hp)),        # w1, b1
        resident((Hp, 2 * Zp)), resident((1, 2 * Zp)),  # fused w2||w3, b2||b3
        resident((Zp, Hp)), resident((1, Hp)),        # w4, b4
        resident((Hp, Dp)), resident((1, Dp)),        # w5, b5
    ]
    out_specs = (
        batched((tb, Zp)),                               # z
        batched((tb, Dp)),                               # x_hat
        pl.BlockSpec((1, 8, 128), lambda i: (i, 0, 0)),  # per-block partial loss
    )
    out_shape = (
        jax.ShapeDtypeStruct((Bp, Zp), jnp.float32),
        jax.ShapeDtypeStruct((Bp, Dp), jnp.float32),
        jax.ShapeDtypeStruct((grid[0], 8, 128), jnp.float32),
    )

    vmem_limit = int(min(max(2 * vmem_estimate(tb), 32 * 1024 * 1024),
                         60 * 1024 * 1024))

    z_p, xhat_p, partial = pl.pallas_call(
        kernel,
        grid=grid,
        in_specs=in_specs,
        out_specs=out_specs,
        out_shape=out_shape,
        compiler_params=pltpu.CompilerParams(
            dimension_semantics=("parallel",),   # batch blocks are independent
            vmem_limit_bytes=vmem_limit,
        ),
    )(xp, ep,
      prepared["w1"], prepared["b1"], prepared["w23"], prepared["b23"],
      prepared["w4"], prepared["b4"], prepared["w5"], prepared["b5"])

    z = z_p[:B, :Z]
    x_hat = xhat_p[:B, :D]
    loss = jnp.sum(partial[:, 0, 0])
    return z, x_hat, loss


# ----------------------------------------------------------------------------
# Parameter handling
# ----------------------------------------------------------------------------
def init_vae_params(key, input_dim, h_dim, z_dim):
    """Deterministic init matching the nn.Linear shapes of the VAE (torch layout)."""
    ks = jax.random.split(key, 10)

    def lin(kw, kb, out_f, in_f):
        bound = 1.0 / jnp.sqrt(in_f)
        w = jax.random.uniform(kw, (out_f, in_f), jnp.float32, -bound, bound)
        b = jax.random.uniform(kb, (1, out_f), jnp.float32, -bound, bound)
        return w, b

    w1, b1 = lin(ks[0], ks[1], h_dim, input_dim)   # encoder hidden
    w2, b2 = lin(ks[2], ks[3], z_dim, h_dim)       # mu head
    w3, b3 = lin(ks[4], ks[5], z_dim, h_dim)       # logvar head
    w4, b4 = lin(ks[6], ks[7], h_dim, z_dim)       # decoder hidden
    w5, b5 = lin(ks[8], ks[9], input_dim, h_dim)   # reconstruction head
    return dict(w1=w1, b1=b1, w2=w2, b2=b2, w3=w3, b3=b3,
                w4=w4, b4=b4, w5=w5, b5=b5)


def prepare_vae_params(params, *, weight_dtype=jnp.bfloat16):
    """One-time prep: transpose nn.Linear weights to [in, out], zero-pad every
    feature dim to a multiple of 128 (lane-dense), cast weights to the MXU
    dtype (bf16; f32 accumulation in-kernel), keep biases f32 lane-padded.
    The mu (w2) and logvar (w3) heads are fused column-wise into one matrix."""
    def pad_t(w, b):
        out_f, in_f = w.shape
        in_p, out_p = _round_up(in_f, 128), _round_up(out_f, 128)
        wt = jnp.zeros((in_p, out_p), weight_dtype).at[:in_f, :out_f].set(
            w.T.astype(weight_dtype))
        bp = jnp.zeros((1, out_p), jnp.float32).at[:, :out_f].set(
            b.reshape(1, -1).astype(jnp.float32))
        return wt, bp

    out = {}
    out["w1"], out["b1"] = pad_t(params["w1"], params["b1"])
    w2t, b2p = pad_t(params["w2"], params["b2"])
    w3t, b3p = pad_t(params["w3"], params["b3"])
    out["w23"] = jnp.concatenate([w2t, w3t], axis=1)    # [Hp, 2*Zp]
    out["b23"] = jnp.concatenate([b2p, b3p], axis=1)    # [1, 2*Zp]
    out["w4"], out["b4"] = pad_t(params["w4"], params["b4"])
    out["w5"], out["b5"] = pad_t(params["w5"], params["b5"])
    return out


# ----------------------------------------------------------------------------
# Pure-JAX reference (unpadded, f32) for a tolerant correctness check
# ----------------------------------------------------------------------------
def vae_reference(x, eps, params):
    h = jax.nn.relu(x @ params["w1"].T + params["b1"])
    mu = h @ params["w2"].T + params["b2"]
    logvar = h @ params["w3"].T + params["b3"]
    std = jnp.exp(0.5 * logvar)
    z = mu + eps * std
    h2 = jax.nn.relu(z @ params["w4"].T + params["b4"])
    x_hat = jax.nn.sigmoid(h2 @ params["w5"].T + params["b5"])
    e = 1e-12
    xh = jnp.clip(x_hat, e, 1.0 - e)
    bce = -jnp.sum(x * jnp.log(xh) + (1.0 - x) * jnp.log(1.0 - xh))
    kl = -0.5 * jnp.sum(1.0 + logvar - mu * mu - jnp.exp(logvar))
    return z, x_hat, bce + kl


def agent_forward(x, eps, prepared):
    """Synthetic Agent.forward: returns {'loss': loss_vae (+ llm_loss), 'vae_z': z}.

    # TODO(synk): the Llama LM (+LoRA, user_embedding injection) loss term and
    # the tokenizer / prompt-string assembly are not representable in Pallas;
    # only the VAE compute (vae_z, loss_vae) is implemented here.
    """
    vae_z, _, loss_vae = vae_forward(x, eps, prepared)
    return {"loss": loss_vae, "vae_z": vae_z}


if __name__ == "__main__":
    key = jax.random.PRNGKey(0)
    k_x, k_eps, k_p = jax.random.split(key, 3)

    # Small shapes consistent with VAE(input_dim, h_dim, z_dim)
    B, input_dim, h_dim, z_dim = 2, 32, 16, 8

    # "query_driven" embedding stand-in in [0, 1] so BCE is well-defined.
    x = jax.random.uniform(k_x, (B, input_dim), jnp.float32)
    eps = jax.random.normal(k_eps, (B, z_dim), jnp.float32)

    params = init_vae_params(k_p, input_dim, h_dim, z_dim)
    prepared = prepare_vae_params(params)          # one-time layout prep

    out = agent_forward(x, eps, prepared)
    jax.block_until_ready(out)

    z = out["vae_z"]
    loss = out["loss"]
    z_ref, _, loss_ref = vae_reference(x, eps, params)

    assert z.shape == (B, z_dim)
    assert bool(jnp.isfinite(loss))
    assert jnp.allclose(z, z_ref, rtol=5e-2, atol=5e-2)
    assert jnp.allclose(loss, loss_ref, rtol=5e-2, atol=5e-2)
    print("KERNEL_OK")
</pallas_src>

<mosaic_0001>
module attributes {stable_mosaic.version = 11 : i64} {
  func.func @_vae_kernel(%arg0: i32, %arg1: memref<8x128xf32, #tpu.memory_space<vmem>>, %arg2: memref<8x128xf32, #tpu.memory_space<vmem>>, %arg3: memref<128x128xbf16, #tpu.memory_space<vmem>>, %arg4: memref<1x128xf32, #tpu.memory_space<vmem>>, %arg5: memref<128x256xbf16, #tpu.memory_space<vmem>>, %arg6: memref<1x256xf32, #tpu.memory_space<vmem>>, %arg7: memref<128x128xbf16, #tpu.memory_space<vmem>>, %arg8: memref<1x128xf32, #tpu.memory_space<vmem>>, %arg9: memref<128x128xbf16, #tpu.memory_space<vmem>>, %arg10: memref<1x128xf32, #tpu.memory_space<vmem>>, %arg11: memref<8x128xf32, #tpu.memory_space<vmem>>, %arg12: memref<8x128xf32, #tpu.memory_space<vmem>>, %arg13: memref<1x8x128xf32, #tpu.memory_space<vmem>>) attributes {dimension_semantics = [#tpu.dimension_semantics<parallel>], iteration_bounds = array<i64: 1>, scalar_prefetch = 0 : i64, scratch_operands = 0 : i64, tpu.core_type = #tpu.core_type<tc>, window_params = [{transform_indices = @transform_0, window_bounds = array<i64: 8, 128>}, {transform_indices = @transform_1, window_bounds = array<i64: 8, 128>}, {pipeline_mode = #tpu.pipeline_mode<synchronous>, transform_indices = @transform_2, window_bounds = array<i64: 128, 128>}, {pipeline_mode = #tpu.pipeline_mode<synchronous>, transform_indices = @transform_3, window_bounds = array<i64: 1, 128>}, {pipeline_mode = #tpu.pipeline_mode<synchronous>, transform_indices = @transform_4, window_bounds = array<i64: 128, 256>}, {pipeline_mode = #tpu.pipeline_mode<synchronous>, transform_indices = @transform_5, window_bounds = array<i64: 1, 256>}, {pipeline_mode = #tpu.pipeline_mode<synchronous>, transform_indices = @transform_6, window_bounds = array<i64: 128, 128>}, {pipeline_mode = #tpu.pipeline_mode<synchronous>, transform_indices = @transform_7, window_bounds = array<i64: 1, 128>}, {pipeline_mode = #tpu.pipeline_mode<synchronous>, transform_indices = @transform_8, window_bounds = array<i64: 128, 128>}, {pipeline_mode = #tpu.pipeline_mode<synchronous>, transform_indices = @transform_9, window_bounds = array<i64: 1, 128>}, {transform_indices = @transform_10, window_bounds = array<i64: 8, 128>}, {transform_indices = @transform_11, window_bounds = array<i64: 8, 128>}, {transform_indices = @transform_12, window_bounds = array<i64: 1, 8, 128>}]} {
    %c0 = arith.constant 0 : index
    %c0_0 = arith.constant 0 : index
    %0 = vector.load %arg1[%c0, %c0_0] : memref<8x128xf32, #tpu.memory_space<vmem>>, vector<8x128xf32>
    %c0_1 = arith.constant 0 : index
    %c0_2 = arith.constant 0 : index
    %1 = vector.load %arg2[%c0_1, %c0_2] : memref<8x128xf32, #tpu.memory_space<vmem>>, vector<8x128xf32>
    %2 = arith.truncf %0 : vector<8x128xf32> to vector<8x128xbf16>
    %c0_3 = arith.constant 0 : index
    %c0_4 = arith.constant 0 : index
    %3 = vector.load %arg3[%c0_3, %c0_4] : memref<128x128xbf16, #tpu.memory_space<vmem>>, vector<128x128xbf16>
    %cst = arith.constant dense<0.000000e+00> : vector<8x128xf32>
    %4 = tpu.matmul %2, %3, %cst {dimension_numbers = #tpu.dot_dimension_numbers<[1], [0], [0], [1], [0, 0, 1, 1], [], []>} : vector<8x128xbf16>, vector<128x128xbf16>, vector<8x128xf32> -> vector<8x128xf32>
    %c0_5 = arith.constant 0 : index
    %c0_6 = arith.constant 0 : index
    %5 = vector.load %arg4[%c0_5, %c0_6] : memref<1x128xf32, #tpu.memory_space<vmem>>, vector<1x128xf32>
    %6 = vector.broadcast %5 : vector<1x128xf32> to vector<8x128xf32>
    %7 = arith.addf %4, %6 : vector<8x128xf32>
    %cst_7 = arith.constant 0.000000e+00 : f32
    %8 = vector.broadcast %cst_7 : f32 to vector<8x128xf32>
    %9 = arith.maximumf %7, %8 : vector<8x128xf32>
    %10 = arith.truncf %9 : vector<8x128xf32> to vector<8x128xbf16>
    %c0_8 = arith.constant 0 : index
    %c0_9 = arith.constant 0 : index
    %11 = vector.load %arg5[%c0_8, %c0_9] : memref<128x256xbf16, #tpu.memory_space<vmem>>, vector<128x256xbf16>
    %cst_10 = arith.constant dense<0.000000e+00> : vector<8x256xf32>
    %12 = tpu.matmul %10, %11, %cst_10 {dimension_numbers = #tpu.dot_dimension_numbers<[1], [0], [0], [1], [0, 0, 1, 1], [], []>} : vector<8x128xbf16>, vector<128x256xbf16>, vector<8x256xf32> -> vector<8x256xf32>
    %c0_11 = arith.constant 0 : index
    %c0_12 = arith.constant 0 : index
    %13 = vector.load %arg6[%c0_11, %c0_12] : memref<1x256xf32, #tpu.memory_space<vmem>>, vector<1x256xf32>
    %14 = vector.broadcast %13 : vector<1x256xf32> to vector<8x256xf32>
    %15 = arith.addf %12, %14 : vector<8x256xf32>
    %16 = vector.extract_strided_slice %15 {offsets = [0, 0], sizes = [8, 128], strides = [1, 1]} : vector<8x256xf32> to vector<8x128xf32>
    %17 = vector.extract_strided_slice %15 {offsets = [0, 128], sizes = [8, 128], strides = [1, 1]} : vector<8x256xf32> to vector<8x128xf32>
    %cst_13 = arith.constant 5.000000e-01 : f32
    %18 = vector.broadcast %cst_13 : f32 to vector<8x128xf32>
    %19 = arith.mulf %18, %17 : vector<8x128xf32>
    %20 = math.exp %19 : vector<8x128xf32>
    %21 = arith.mulf %1, %20 : vector<8x128xf32>
    %22 = arith.addf %16, %21 : vector<8x128xf32>
    %23 = arith.truncf %22 : vector<8x128xf32> to vector<8x128xbf16>
    %c0_14 = arith.constant 0 : index
    %c0_15 = arith.constant 0 : index
    %24 = vector.load %arg7[%c0_14, %c0_15] : memref<128x128xbf16, #tpu.memory_space<vmem>>, vector<128x128xbf16>
    %cst_16 = arith.constant dense<0.000000e+00> : vector<8x128xf32>
    %25 = tpu.matmul %23, %24, %cst_16 {dimension_numbers = #tpu.dot_dimension_numbers<[1], [0], [0], [1], [0, 0, 1, 1], [], []>} : vector<8x128xbf16>, vector<128x128xbf16>, vector<8x128xf32> -> vector<8x128xf32>
    %c0_17 = arith.constant 0 : index
    %c0_18 = arith.constant 0 : index
    %26 = vector.load %arg8[%c0_17, %c0_18] : memref<1x128xf32, #tpu.memory_space<vmem>>, vector<1x128xf32>
    %27 = vector.broadcast %26 : vector<1x128xf32> to vector<8x128xf32>
    %28 = arith.addf %25, %27 : vector<8x128xf32>
    %cst_19 = arith.constant 0.000000e+00 : f32
    %29 = vector.broadcast %cst_19 : f32 to vector<8x128xf32>
    %30 = arith.maximumf %28, %29 : vector<8x128xf32>
    %31 = arith.truncf %30 : vector<8x128xf32> to vector<8x128xbf16>
    %c0_20 = arith.constant 0 : index
    %c0_21 = arith.constant 0 : index
    %32 = vector.load %arg9[%c0_20, %c0_21] : memref<128x128xbf16, #tpu.memory_space<vmem>>, vector<128x128xbf16>
    %cst_22 = arith.constant dense<0.000000e+00> : vector<8x128xf32>
    %33 = tpu.matmul %31, %32, %cst_22 {dimension_numbers = #tpu.dot_dimension_numbers<[1], [0], [0], [1], [0, 0, 1, 1], [], []>} : vector<8x128xbf16>, vector<128x128xbf16>, vector<8x128xf32> -> vector<8x128xf32>
    %c0_23 = arith.constant 0 : index
    %c0_24 = arith.constant 0 : index
    %34 = vector.load %arg10[%c0_23, %c0_24] : memref<1x128xf32, #tpu.memory_space<vmem>>, vector<1x128xf32>
    %35 = vector.broadcast %34 : vector<1x128xf32> to vector<8x128xf32>
    %36 = arith.addf %33, %35 : vector<8x128xf32>
    %37 = arith.negf %36 : vector<8x128xf32>
    %38 = math.exp %37 : vector<8x128xf32>
    %cst_25 = arith.constant 1.000000e+00 : f32
    %39 = vector.broadcast %cst_25 : f32 to vector<8x128xf32>
    %40 = arith.addf %39, %38 : vector<8x128xf32>
    %41 = arith.divf %39, %40 : vector<8x128xf32>
    %c8_i32 = arith.constant 8 : i32
    %42 = arith.muli %arg0, %c8_i32 : i32
    %43 = tpu.iota {dimensions = array<i32: 0>} : vector<8x1xi32>
    %44 = vector.broadcast %42 : i32 to vector<8x1xi32>
    %45 = arith.addi %44, %43 : vector<8x1xi32>
    %c2_i32 = arith.constant 2 : i32
    %46 = vector.broadcast %c2_i32 : i32 to vector<8x1xi32>
    %47 = arith.cmpi slt, %45, %46 : vector<8x1xi32>
    %48 = arith.extui %47 : vector<8x1xi1> to vector<8x1xi32>
    %49 = arith.sitofp %48 : vector<8x1xi32> to vector<8x1xf32>
    %50 = tpu.iota {dimensions = array<i32: 1>} : vector<1x128xi32>
    %c32_i32 = arith.constant 32 : i32
    %51 = vector.broadcast %c32_i32 : i32 to vector<1x128xi32>
    %52 = arith.cmpi slt, %50, %51 : vector<1x128xi32>
    %53 = arith.extui %52 : vector<1x128xi1> to vector<1x128xi32>
    %54 = arith.sitofp %53 : vector<1x128xi32> to vector<1x128xf32>
    %cst_26 = arith.constant 0.000000e+00 : f32
    %55 = vector.broadcast %cst_26 : f32 to vector<8x128xf32>
    %56 = arith.maximumf %36, %55 : vector<8x128xf32>
    %57 = arith.mulf %36, %0 : vector<8x128xf32>
    %58 = arith.subf %56, %57 : vector<8x128xf32>
    %cst_27 = arith.constant 1.000000e+00 : f32
    %59 = vector.broadcast %cst_27 : f32 to vector<8x128xf32>
    %60 = arith.subf %59, %41 : vector<8x128xf32>
    %61 = arith.maximumf %41, %60 : vector<8x128xf32>
    %62 = math.log %61 : vector<8x128xf32>
    %63 = arith.subf %58, %62 : vector<8x128xf32>
    %64 = vector.broadcast %54 : vector<1x128xf32> to vector<8x128xf32>
    %65 = arith.mulf %63, %64 : vector<8x128xf32>
    %66 = vector.broadcast %49 : vector<8x1xf32> to vector<8x128xf32>
    %67 = arith.mulf %65, %66 : vector<8x128xf32>
    %68 = vector.shape_cast %67 : vector<8x128xf32> to vector<1x8x128xf32>
    %cst_28 = arith.constant dense<0.000000e+00> : vector<1xf32>
    %69 = vector.multi_reduction <add>, %68, %cst_28 [1, 2] : vector<1x8x128xf32> to vector<1xf32>
    %70 = vector.shape_cast %69 : vector<1xf32> to vector<1x1x1xf32>
    %71 = vector.extract %70[0, 0, 0] : f32 from vector<1x1x1xf32>
    %cst_29 = arith.constant 1.000000e+00 : f32
    %72 = vector.broadcast %cst_29 : f32 to vector<8x128xf32>
    %73 = arith.addf %72, %17 : vector<8x128xf32>
    %74 = arith.mulf %16, %16 : vector<8x128xf32>
    %75 = arith.subf %73, %74 : vector<8x128xf32>
    %76 = arith.mulf %20, %20 : vector<8x128xf32>
    %77 = arith.subf %75, %76 : vector<8x128xf32>
    %cst_30 = arith.constant -5.000000e-01 : f32
    %78 = vector.broadcast %cst_30 : f32 to vector<8x128xf32>
    %79 = arith.mulf %78, %77 : vector<8x128xf32>
    %80 = vector.broadcast %49 : vector<8x1xf32> to vector<8x128xf32>
    %81 = arith.mulf %79, %80 : vector<8x128xf32>
    %82 = vector.shape_cast %81 : vector<8x128xf32> to vector<1x8x128xf32>
    %cst_31 = arith.constant dense<0.000000e+00> : vector<1xf32>
    %83 = vector.multi_reduction <add>, %82, %cst_31 [1, 2] : vector<1x8x128xf32> to vector<1xf32>
    %84 = vector.shape_cast %83 : vector<1xf32> to vector<1x1x1xf32>
    %85 = vector.extract %84[0, 0, 0] : f32 from vector<1x1x1xf32>
    %c0_32 = arith.constant 0 : index
    %c0_33 = arith.constant 0 : index
    %86 = vector.load %arg11[%c0_32, %c0_33] : memref<8x128xf32, #tpu.memory_space<vmem>>, vector<8x128xf32>
    tpu.vector_store %arg11[%c0_32, %c0_33], %22 {strides = array<i32>} : memref<8x128xf32, #tpu.memory_space<vmem>>, vector<8x128xf32>,
    %c0_34 = arith.constant 0 : index
    %c0_35 = arith.constant 0 : index
    %87 = vector.load %arg12[%c0_34, %c0_35] : memref<8x128xf32, #tpu.memory_space<vmem>>, vector<8x128xf32>
    tpu.vector_store %arg12[%c0_34, %c0_35], %41 {strides = array<i32>} : memref<8x128xf32, #tpu.memory_space<vmem>>, vector<8x128xf32>,
    %88 = arith.addf %71, %85 : f32
    %89 = vector.broadcast %88 : f32 to vector<1x8x128xf32>
    %c0_36 = arith.constant 0 : index
    %c0_37 = arith.constant 0 : index
    %c0_38 = arith.constant 0 : index
    %90 = vector.load %arg13[%c0_36, %c0_37, %c0_38] : memref<1x8x128xf32, #tpu.memory_space<vmem>>, vector<1x8x128xf32>
    tpu.vector_store %arg13[%c0_36, %c0_37, %c0_38], %89 {strides = array<i32>} : memref<1x8x128xf32, #tpu.memory_space<vmem>>, vector<1x8x128xf32>,
    return
  }
  func.func @transform_0(%arg0: i32) -> (i32, i32) {
    %c0_i32 = arith.constant 0 : i32
    %c0_i32_0 = arith.constant 0 : i32
    return %arg0, %c0_i32 : i32, i32
  }
  func.func @transform_1(%arg0: i32) -> (i32, i32) {
    %c0_i32 = arith.constant 0 : i32
    %c0_i32_0 = arith.constant 0 : i32
    return %arg0, %c0_i32 : i32, i32
  }
  func.func @transform_2(%arg0: i32) -> (i32, i32) {
    %c0_i32 = arith.constant 0 : i32
    %c0_i32_0 = arith.constant 0 : i32
    %c0_i32_1 = arith.constant 0 : i32
    return %c0_i32, %c0_i32_0 : i32, i32
  }
  func.func @transform_3(%arg0: i32) -> (i32, i32) {
    %c0_i32 = arith.constant 0 : i32
    %c0_i32_0 = arith.constant 0 : i32
    %c0_i32_1 = arith.constant 0 : i32
    return %c0_i32, %c0_i32_0 : i32, i32
  }
  func.func @transform_4(%arg0: i32) -> (i32, i32) {
    %c0_i32 = arith.constant 0 : i32
    %c0_i32_0 = arith.constant 0 : i32
    %c0_i32_1 = arith.constant 0 : i32
    return %c0_i32, %c0_i32_0 : i32, i32
  }
  func.func @transform_5(%arg0: i32) -> (i32, i32) {
    %c0_i32 = arith.constant 0 : i32
    %c0_i32_0 = arith.constant 0 : i32
    %c0_i32_1 = arith.constant 0 : i32
    return %c0_i32, %c0_i32_0 : i32, i32
  }
  func.func @transform_6(%arg0: i32) -> (i32, i32) {
    %c0_i32 = arith.constant 0 : i32
    %c0_i32_0 = arith.constant 0 : i32
    %c0_i32_1 = arith.constant 0 : i32
    return %c0_i32, %c0_i32_0 : i32, i32
  }
  func.func @transform_7(%arg0: i32) -> (i32, i32) {
    %c0_i32 = arith.constant 0 : i32
    %c0_i32_0 = arith.constant 0 : i32
    %c0_i32_1 = arith.constant 0 : i32
    return %c0_i32, %c0_i32_0 : i32, i32
  }
  func.func @transform_8(%arg0: i32) -> (i32, i32) {
    %c0_i32 = arith.constant 0 : i32
    %c0_i32_0 = arith.constant 0 : i32
    %c0_i32_1 = arith.constant 0 : i32
    return %c0_i32, %c0_i32_0 : i32, i32
  }
  func.func @transform_9(%arg0: i32) -> (i32, i32) {
    %c0_i32 = arith.constant 0 : i32
    %c0_i32_0 = arith.constant 0 : i32
    %c0_i32_1 = arith.constant 0 : i32
    return %c0_i32, %c0_i32_0 : i32, i32
  }
  func.func @transform_10(%arg0: i32) -> (i32, i32) {
    %c0_i32 = arith.constant 0 : i32
    %c0_i32_0 = arith.constant 0 : i32
    return %arg0, %c0_i32 : i32, i32
  }
  func.func @transform_11(%arg0: i32) -> (i32, i32) {
    %c0_i32 = arith.constant 0 : i32
    %c0_i32_0 = arith.constant 0 : i32
    return %arg0, %c0_i32 : i32, i32
  }
  func.func @transform_12(%arg0: i32) -> (i32, i32, i32) {
    %c0_i32 = arith.constant 0 : i32
    %c0_i32_0 = arith.constant 0 : i32
    %c0_i32_1 = arith.constant 0 : i32
    return %arg0, %c0_i32, %c0_i32_0 : i32, i32, i32
  }
}

</mosaic_0001>

<bundles_post_ra>
// kernel: tpu_custom_call.1
= control target key start
LH: loop header
LB: loop body
LE: loop exit
PB: predicated region body
PF: predicated region fallthrough
CT: control target
= control target key end

     0   :  { %18 = vsyncpa [#allocation3], 0  ;;  %s1410_s0 = inlined_call_operand.hbm [shape: f32[8,128], index: 0, kind: input, shape index: {}]   ;;  %s1411_s1 = inlined_call_operand.hbm [shape: f32[8,128], index: 1, kind: input, shape index: {}]   ;;  %s1412_s2 = inlined_call_operand.hbm [shape: bf16[128,128], index: 2, kind: input, shape index: {}]   ;;  %s1413_s3 = inlined_call_operand.vmem [shape: f32[1,128], index: 3, kind: input, shape index: {}]   ;;  %s1414_s4 = inlined_call_operand.hbm [shape: bf16[128,256], index: 4, kind: input, shape index: {}]   ;;  %s1415_s5 = inlined_call_operand.vmem [shape: f32[1,256], index: 5, kind: input, shape index: {}]   ;;  %s1416_s6 = inlined_call_operand.hbm [shape: bf16[128,128], index: 6, kind: input, shape index: {}]   ;;  %s1417_s7 = inlined_call_operand.vmem [shape: f32[1,128], index: 7, kind: input, shape index: {}]   ;;  %s1418_s8 = inlined_call_operand.hbm [shape: bf16[128,128], index: 8, kind: input, shape index: {}]   ;;  %s1419_s9 = inlined_call_operand.vmem [shape: f32[1,128], index: 9, kind: input, shape index: {}]   ;;  %s1420_s10 = inlined_call_operand.hbm [shape: f32[8,128], index: 10, kind: output, shape index: {0}]   ;;  %s1421_s11 = inlined_call_operand.hbm [shape: f32[8,128], index: 11, kind: output, shape index: {1}]   ;;  %s1422_s12 = inlined_call_operand.hbm [shape: f32[1,8,128], index: 12, kind: output, shape index: {2}]  }
   0x1   :  { %19 = vsyncpa [#allocation6], 0 }
   0x2   :  { %20 = vsyncpa [#allocation9], 0 }
   0x3   :  { %21 = vsyncpa [#allocation12], 0 }
   0x4   :  { %22 = vsyncpa [#allocation4], 0 }
   0x5   :  { %23 = vsyncpa [#allocation15], 0  ;;  %s1137_s21 = smov [#allocation5]   ;;  %s1138_s23 = smov [#allocation8]  }
   0x6   :  { %s40_s22 = sshll.u32 %s1137_s21, 4  ;;  %s63_s24 = sshll.u32 %s1138_s23, 4  ;;  %s41_s22 = int_to_ptr.vmem [resolvable:$true] %s40_s22  ;;  %s1218_s24 = int_to_ptr.vmem [resolvable:$true] %s63_s24 }
   0x7   :  { %s927_s27 = scalar_lea.hbm %s1411_s1, 128 }
   0x8   :  { %p928_p0 = scmp.ne.s32.totalorder %s1411_s1, %s927_s27  ;;  %p931_p1 = scmp.lt.u32.totalorder %s927_s27, %s1411_s1 }
   0xa   :  { %p933_p2 = pnand %p931_p1, %p928_p0 }
   0xc   :  { %936 = shalt.err (!%p933_p2)
}
   0xd   :  { %s937_s14 = scalar_lea.vmem %s41_s22, 128  ;;  %p942_p4 = scmp.lt.s32.totalorder %s41_s22, %s41_s22 }
   0xe   :  { %p938_p3 = scmp.ne.s32.totalorder %s41_s22, %s937_s14  ;;  %p943_p5 = scmp.lt.s32.totalorder %s937_s14, %s937_s14 }
  0x10   :  { %p944_p6 = por %p943_p5, %p942_p4 }
  0x12   :  { %p945_p7 = pnand %p944_p6, %p938_p3 }
  0x14   :  { %948 = shalt.err (!%p945_p7)
}
  0x15   :  { %43 = dma.hbm_to_vmem [thread:$0]  %s1411_s1, 128, %s41_s22, [#allocation6]  }
  0x16   :  { %s949_s19 = scalar_lea.hbm %s1414_s4, 2048 }
  0x17   :  { %p950_p8 = scmp.ne.s32.totalorder %s1414_s4, %s949_s19  ;;  %p953_p9 = scmp.lt.u32.totalorder %s949_s19, %s1414_s4 }
  0x19   :  { %p955_p10 = pnand %p953_p9, %p950_p8 }
  0x1b   :  { %958 = shalt.err (!%p955_p10)
}
  0x1c   :  { %s959_s26 = scalar_lea.vmem %s1218_s24, 2048  ;;  %p964_p12 = scmp.lt.s32.totalorder %s1218_s24, %s1218_s24 }
  0x1d   :  { %p960_p11 = scmp.ne.s32.totalorder %s1218_s24, %s959_s26  ;;  %p965_p13 = scmp.lt.s32.totalorder %s959_s26, %s959_s26 }
  0x1f   :  { %p966_p0 = por %p965_p13, %p964_p12 }
  0x21   :  { %p967_p1 = pnand %p966_p0, %p960_p11 }
  0x23   :  { %970 = shalt.err (!%p967_p1)
}
  0x24   :  { %s1139_s1 = smov 128   ;;  %s1140_s22 = smov 8  }
  0x25   :  { %69 = dma.hbm_to_vmem [thread:$0]  %s1414_s4, 2048, %s1218_s24, [#allocation9], %s1139_s1, %s1139_s1, %s1140_s22  }
  0x26   :  { %s1141_s29 = smov [#allocation2]   ;;  %s1142_s13 = smov [#allocation7]  }
  0x27   :  { %s30_s30 = sshll.u32 %s1141_s29, 4  ;;  %s49_s14 = sshll.u32 %s1142_s13, 4  ;;  %s31_s30 = int_to_ptr.vmem [resolvable:$true] %s30_s30  ;;  %s1249_s14 = int_to_ptr.vmem [resolvable:$true] %s49_s14 }
  0x28   :  { %s971_s17 = scalar_lea.hbm %s1410_s0, 128 }
  0x29   :  { %p972_p2 = scmp.ne.s32.totalorder %s1410_s0, %s971_s17  ;;  %p975_p3 = scmp.lt.u32.totalorder %s971_s17, %s1410_s0 }
  0x2b   :  { %p977_p4 = pnand %p975_p3, %p972_p2 }
  0x2d   :  { %980 = shalt.err (!%p977_p4)
}
  0x2e   :  { %s981_s4 = scalar_lea.vmem %s31_s30, 128  ;;  %p986_p6 = scmp.lt.s32.totalorder %s31_s30, %s31_s30 }
  0x2f   :  { %p982_p5 = scmp.ne.s32.totalorder %s31_s30, %s981_s4  ;;  %p987_p7 = scmp.lt.s32.totalorder %s981_s4, %s981_s4 }
  0x31   :  { %p988_p8 = por %p987_p7, %p986_p6 }
  0x33   :  { %p989_p9 = pnand %p988_p8, %p982_p5 }
  0x35   :  { %992 = shalt.err (!%p989_p9)
}
  0x36   :  { %33 = dma.hbm_to_vmem [thread:$0]  %s1410_s0, 128, %s31_s30, [#allocation3]  }
  0x37   :  { %s993_s1 = scalar_lea.hbm %s1412_s2, 1024 }
  0x38   :  { %p994_p10 = scmp.ne.s32.totalorder %s1412_s2, %s993_s1  ;;  %p997_p11 = scmp.lt.u32.totalorder %s993_s1, %s1412_s2 }
  0x3a   :  { %p999_p12 = pnand %p997_p11, %p994_p10 }
  0x3c   :  { %1002 = shalt.err (!%p999_p12)
}
  0x3d   :  { %s1003_s13 = scalar_lea.vmem %s1249_s14, 1024  ;;  %p1008_p0 = scmp.lt.s32.totalorder %s1249_s14, %s1249_s14 }
  0x3e   :  { %p1004_p13 = scmp.ne.s32.totalorder %s1249_s14, %s1003_s13  ;;  %p1009_p1 = scmp.lt.s32.totalorder %s1003_s13, %s1003_s13 }
  0x40   :  { %p1010_p2 = por %p1009_p1, %p1008_p0 }
  0x42   :  { %p1011_p3 = pnand %p1010_p2, %p1004_p13 }
  0x44   :  { %1014 = shalt.err (!%p1011_p3)
}
  0x45   :  { %s1143_s0 = smov 64   ;;  %s1144_s30 = smov 4  }
  0x46   :  { %55 = dma.hbm_to_vmem [thread:$0]  %s1412_s2, 1024, %s1249_s14, [#allocation6], %s1143_s0, %s1143_s0, %s1144_s30  }
  0x47   :  { %s1145_s17 = smov [#allocation10]   ;;  %s1146_s19 = smov [#allocation11]  }
  0x48   :  { %s77_s18 = sshll.u32 %s1145_s17, 4  ;;  %s91_s20 = sshll.u32 %s1146_s19, 4  ;;  %s78_s18 = int_to_ptr.vmem [resolvable:$true] %s77_s18  ;;  %s1283_s20 = int_to_ptr.vmem [resolvable:$true] %s91_s20 }
  0x49   :  { %s1015_s24 = scalar_lea.hbm %s1416_s6, 1024 }
  0x4a   :  { %p1016_p4 = scmp.ne.s32.totalorder %s1416_s6, %s1015_s24  ;;  %p1019_p5 = scmp.lt.u32.totalorder %s1015_s24, %s1416_s6 }
  0x4c   :  { %p1021_p6 = pnand %p1019_p5, %p1016_p4 }
  0x4e   :  { %1024 = shalt.err (!%p1021_p6)
}
  0x4f   :  { %s1025_s2 = scalar_lea.vmem %s78_s18, 1024  ;;  %p1030_p8 = scmp.lt.s32.totalorder %s78_s18, %s78_s18 }
  0x50   :  { %p1026_p7 = scmp.ne.s32.totalorder %s78_s18, %s1025_s2  ;;  %p1031_p9 = scmp.lt.s32.totalorder %s1025_s2, %s1025_s2 }
  0x52   :  { %p1032_p10 = por %p1031_p9, %p1030_p8 }
  0x54   :  { %p1033_p11 = pnand %p1032_p10, %p1026_p7 }
  0x56   :  { %1036 = shalt.err (!%p1033_p11)
}
  0x57   :  { %83 = dma.hbm_to_vmem [thread:$0]  %s1416_s6, 1024, %s78_s18, [#allocation9], %s1143_s0, %s1143_s0, %s1144_s30  }
  0x58   :  { %s1037_s29 = scalar_lea.hbm %s1418_s8, 1024 }
  0x59   :  { %p1038_p12 = scmp.ne.s32.totalorder %s1418_s8, %s1037_s29  ;;  %p1041_p13 = scmp.lt.u32.totalorder %s1037_s29, %s1418_s8 }
  0x5b   :  { %p1043_p0 = pnand %p1041_p13, %p1038_p12 }
  0x5d   :  { %1046 = shalt.err (!%p1043_p0)
}
  0x5e   :  { %s1047_s19 = scalar_lea.vmem %s1283_s20, 1024  ;;  %p1052_p2 = scmp.lt.s32.totalorder %s1283_s20, %s1283_s20 }
  0x5f   :  { %p1048_p1 = scmp.ne.s32.totalorder %s1283_s20, %s1047_s19  ;;  %p1053_p3 = scmp.lt.s32.totalorder %s1047_s19, %s1047_s19 }
  0x61   :  { %p1054_p4 = por %p1053_p3, %p1052_p2 }
  0x63   :  { %p1055_p5 = pnand %p1054_p4, %p1048_p1 }
  0x65   :  { %1058 = shalt.err (!%p1055_p5)
}
  0x66   :  { %97 = dma.hbm_to_vmem [thread:$0]  %s1418_s8, 1024, %s1283_s20, [#allocation12], %s1143_s0, %s1143_s0, %s1144_s30  }
  0x67   :  { %1125 = dma.done.wait [#allocation3], 128  }
  0x68   :  { %1126 = vsyncadd [#allocation3], 4294967168 }
  0x69   :  { %1127 = dma.done.wait [#allocation6], 1152  }
  0x6a   :  { %1128 = vsyncadd [#allocation6], 4294966144 }
  0x6b   :  { %1129 = dma.done.wait [#allocation9], 3072  }
  0x6c   :  { %1130 = vsyncadd [#allocation9], 4294964224 }
  0x6d   :  { %1131 = dma.done.wait [#allocation12], 1024  }
  0x6e   :  { %1132 = vsyncadd [#allocation12], 4294966272  ;;  %v1147_v0 = vmov 0.0   ;;  %vm1148_vm0 = vmmov 0   ;;  %v871_v1 = vld [vmem:[#allocation7] sm:$0xff]   ;;  %v872_v2 = vld [vmem:[#allocation7 + $0x8] sm:$0xff]   ;;  %v253_v50 = vlaneseq }
  0x6f   :  { %791 = vmatprep.subr.bf16.mxu0 %v1147_v0  ;;  %807 = vmatprep.mubr.msk.bf16.mxu0 %vm1148_vm0, %v1147_v0  ;;  %v873_v3 = vld [vmem:[#allocation7 + $0x10] sm:$0xff]   ;;  %v879_v4 = vld [vmem:[#allocation8 + $0x4] ss:$8 sps:$4 sm:$0xff]   ;;  %v881_v5 = vld [vmem:[#allocation8] ss:$8 sps:$4 sm:$0xff]   ;;  %v1149_v27 = vmov 0  }
  0x70   :  { %792 = vmatpush3.bf16.msra.mxu0 %v871_v1  ;;  %v874_v6 = vld [vmem:[#allocation7 + $0x18] sm:$0xff]   ;;  %343 = vmatprep.subr.bf16.mxu1 %v879_v4  ;;  %v885_v9 = vld [vmem:[#allocation8 + $0x24] ss:$8 sps:$4 sm:$0xff]   ;;  %v887_v11 = vld [vmem:[#allocation8 + $0x20] ss:$8 sps:$4 sm:$0xff]   ;;  %v1356_v51 = vshrl.u32 %v253_v50, 7 }
  0x71   :  { %793 = vmatprep.subr.bf16.mxu0 %v1147_v0  ;;  %v882_v7 = vld [vmem:[#allocation8 + $0x14] ss:$8 sps:$4 sm:$0xff]   ;;  %344 = vmatpush1.bf16.msra.mxu1 %v881_v5  ;;  %v884_v8 = vld [vmem:[#allocation8 + $0x10] ss:$8 sps:$4 sm:$0xff]   ;;  %v875_v10 = vld [vmem:[#allocation7 + $0x20] sm:$0xff]   ;;  %s1151_s24 = smov [#allocation13]  }
  0x72   :  { %345 = vmatprep.subr.bf16.mxu1 %v882_v7  ;;  %v876_v12 = vld [vmem:[#allocation7 + $0x28] sm:$0xff]   ;;  %v888_v13 = vld [vmem:[#allocation8 + $0x34] ss:$8 sps:$4 sm:$0xff]   ;;  %v890_v14 = vld [vmem:[#allocation8 + $0x30] ss:$8 sps:$4 sm:$0xff]   ;;  %375 = vmatprep.mubr.bf16.mxu1 %v1149_v27  ;;  %v255_v52 = vsub.s32 0, %v1356_v51 }
  0x73   :  { %v891_v15 = vld [vmem:[#allocation8 + $0x44] ss:$8 sps:$4 sm:$0xff]   ;;  %v877_v16 = vld [vmem:[#allocation7 + $0x30] sm:$0xff]   ;;  %v893_v17 = vld [vmem:[#allocation8 + $0x40] ss:$8 sps:$4 sm:$0xff]   ;;  %v259_v54 = vsub.s32 1, %v1356_v51 }
  0x74   :  { %794 = vmatpush3.bf16.msra.mxu0 %v872_v2  ;;  %v894_v18 = vld [vmem:[#allocation8 + $0x54] ss:$8 sps:$4 sm:$0xff]   ;;  %v896_v21 = vld [vmem:[#allocation8 + $0x50] ss:$8 sps:$4 sm:$0xff]   ;;  %v897_v23 = vld [vmem:[#allocation8 + $0x64] ss:$8 sps:$4 sm:$0xff]  }
  0x75   :  { %795 = vmatprep.subr.bf16.mxu0 %v1147_v0  ;;  %346 = vmatpush1.bf16.msra.mxu1 %v884_v8  ;;  %v878_v19 = vld [vmem:[#allocation7 + $0x38] sm:$0xff]   ;;  %v1329_v20 = vld [vmem:[#allocation2] sm:$0xff]  ;;  %v899_v24 = vld [vmem:[#allocation8 + $0x60] ss:$8 sps:$4 sm:$0xff]   ;;  %vm625_vm2 = vcmp.lt.s32.totalorder %v1356_v51, 2  ;;  %s679_s23 = sshll.u32 %s1151_s24, 4  ;;  %s680_s23 = int_to_ptr.vmem [resolvable:$true] %s679_s23 }
  0x76   :  { %347 = vmatprep.subr.bf16.mxu1 %v885_v9  ;;  %v121_v22 = vpack.c.bf16 %v1329_v20, %v1329_v20  ;;  %v900_v25 = vld [vmem:[#allocation8 + $0x74] ss:$8 sps:$4 sm:$0xff]   ;;  %v902_v26 = vld [vmem:[#allocation8 + $0x70] ss:$8 sps:$4 sm:$0xff]   ;;  %v903_v28 = vld [vmem:[#allocation10] sm:$0xff]  }
  0x77   :  { %v904_v29 = vld [vmem:[#allocation10 + $0x8] sm:$0xff]   ;;  %v718_v30 = vld [vmem:[%s1413_s3] ss:$0 sm:$0xff]  ;;  %v906_v39 = vld [vmem:[#allocation10 + $0x18] sm:$0xff]  }
  0x78   :  { %796 = vmatpush3.bf16.msra.mxu0 %v873_v3  ;;  %v905_v38 = vld [vmem:[#allocation10 + $0x10] sm:$0xff]   ;;  %v907_v40 = vld [vmem:[#allocation10 + $0x20] sm:$0xff]   ;;  %v908_v41 = vld [vmem:[#allocation10 + $0x28] sm:$0xff]  }
  0x79   :  { %797 = vmatprep.subr.bf16.mxu0 %v1147_v0  ;;  %348 = vmatpush1.bf16.msra.mxu1 %v887_v11  ;;  %v909_v42 = vld [vmem:[#allocation10 + $0x30] sm:$0xff]   ;;  %v910_v43 = vld [vmem:[#allocation10 + $0x38] sm:$0xff]   ;;  %v911_v44 = vld [vmem:[#allocation11] sm:$0xff]  }
  0x7a   :  { %349 = vmatprep.subr.bf16.mxu1 %v888_v13  ;;  %v912_v45 = vld [vmem:[#allocation11 + $0x8] sm:$0xff]   ;;  %v913_v46 = vld [vmem:[#allocation11 + $0x10] sm:$0xff]   ;;  %v914_v47 = vld [vmem:[#allocation11 + $0x18] sm:$0xff]  }
  0x7b   :  { %v915_v48 = vld [vmem:[#allocation11 + $0x20] sm:$0xff]   ;;  %v916_v49 = vld [vmem:[#allocation11 + $0x28] sm:$0xff]   ;;  %v251_v53 = vld [vmem:[%s1415_s5] sm:$0x3] }
  0x7c   :  { %798 = vmatpush3.bf16.msra.mxu0 %v874_v6  ;;  %v256_v55 = vrot.slane %v251_v53, %v255_v52  ;;  %v260_v56 = vrot.slane %v251_v53, %v259_v54  ;;  %v120_v5 = vld [vmem:[#allocation5] sm:$0xff] }
  0x7d   :  { %799 = vmatprep.subr.bf16.mxu0 %v1147_v0  ;;  %350 = vmatpush1.bf16.msra.mxu1 %v890_v14  ;;  %v918_v13 = vld [vmem:[#allocation11 + $0x38] sm:$0xff]   ;;  %v743_v14 = vld [vmem:[%s1417_s7] ss:$0 sm:$0xff]  ;;  %s1150_s7 = smov [#allocation14]  }
  0x7e   :  { %351 = vmatprep.subr.bf16.mxu1 %v891_v15 }
  0x80   :  { %800 = vmatpush3.bf16.msra.mxu0 %v875_v10 }
  0x81   :  { %801 = vmatprep.subr.bf16.mxu0 %v1147_v0  ;;  %352 = vmatpush1.bf16.msra.mxu1 %v893_v17 }
  0x82   :  { %353 = vmatprep.subr.bf16.mxu1 %v894_v18 }
  0x84   :  { %802 = vmatpush3.bf16.msra.mxu0 %v876_v12  ;;  %v917_v12 = vld [vmem:[#allocation11 + $0x30] sm:$0xff]  }
  0x85   :  { %803 = vmatprep.subr.bf16.mxu0 %v1147_v0  ;;  %354 = vmatpush1.bf16.msra.mxu1 %v896_v21 }
  0x86   :  { %355 = vmatprep.subr.bf16.mxu1 %v897_v23  ;;  %v752_v23 = vld [vmem:[%s1419_s9] ss:$0 sm:$0xff]  ;;  %s689_s9 = sshll.u32 %s1150_s7, 4  ;;  %s690_s9 = int_to_ptr.vmem [resolvable:$true] %s689_s9 }
  0x87   :  { %s1059_s25 = scalar_lea.vmem %s690_s9, 128  ;;  %p1064_p7 = scmp.lt.s32.totalorder %s690_s9, %s690_s9 }
  0x88   :  { %804 = vmatpush3.bf16.msra.mxu0 %v877_v16  ;;  %p1060_p6 = scmp.ne.s32.totalorder %s690_s9, %s1059_s25  ;;  %p1065_p8 = scmp.lt.s32.totalorder %s1059_s25, %s1059_s25 }
  0x89   :  { %805 = vmatprep.subr.bf16.mxu0 %v1147_v0  ;;  %356 = vmatpush1.bf16.msra.mxu1 %v899_v24 }
  0x8a   :  { %357 = vmatprep.subr.bf16.mxu1 %v900_v25  ;;  %p1066_p9 = por %p1065_p8, %p1064_p7 }
  0x8c   :  { %806 = vmatpush3.bf16.msra.mxu0 %v878_v19  ;;  %p1067_p10 = pnand %p1066_p9, %p1060_p6 }
  0x8d   :  { %811 = vmatprep.subr.bf16.mxu0 %v1147_v0  ;;  %358 = vmatpush1.bf16.msra.mxu1 %v902_v26 }
  0x8e   :  { %831 = vmatprep.subr.bf16.mxu1 %v1147_v0 }
  0x8f   :  { %808 = vmatmul.mubr.bf16.vlgmr.msra.gmra.mrb[0].mxu0 %v121_v22 }
  0x90   :  { %827 = vmatprep.mubr.msk.bf16.mxu0 %vm1148_vm0, %v1147_v0  ;;  %812 = vmatpush3.bf16.msra.mxu0 %v903_v28 }
  0x91   :  { %813 = vmatprep.subr.bf16.mxu0 %v1147_v0 }
  0x94   :  { %814 = vmatpush3.bf16.msra.mxu0 %v904_v29 }
  0x95   :  { %815 = vmatprep.subr.bf16.mxu0 %v1147_v0 }
  0x98   :  { %816 = vmatpush3.bf16.msra.mxu0 %v905_v38 }
  0x99   :  { %817 = vmatprep.subr.bf16.mxu0 %v1147_v0 }
  0x9c   :  { %818 = vmatpush3.bf16.msra.mxu0 %v906_v39 }
  0x9d   :  { %819 = vmatprep.subr.bf16.mxu0 %v1147_v0 }
  0xa0   :  { %820 = vmatpush3.bf16.msra.mxu0 %v907_v40 }
  0xa1   :  { %821 = vmatprep.subr.bf16.mxu0 %v1147_v0 }
  0xa4   :  { %822 = vmatpush3.bf16.msra.mxu0 %v908_v41 }
  0xa5   :  { %823 = vmatprep.subr.bf16.mxu0 %v1147_v0 }
  0xa8   :  { %824 = vmatpush3.bf16.msra.mxu0 %v909_v42 }
  0xa9   :  { %825 = vmatprep.subr.bf16.mxu0 %v1147_v0 }
  0xac   :  { %826 = vmatpush3.bf16.msra.mxu0 %v910_v43 }
 0x162   :  { %v227_v31 = vpop.f32.mrb[0].mxu0 }
 0x163   :  { %v228_v32 = vadd.f32 %v718_v30, %v227_v31  ;;  %v809_v33 = vpop.f32.mrb[1].mxu0 }
 0x164   :  { %v230_v34 = vpop.f32.mrb[2].mxu0 }
 0x165   :  { %v233_v35 = vmax.f32 %v228_v32, 0.0  ;;  %v810_v36 = vpop.f32.mrb[3].mxu0 }
 0x167   :  { %v234_v37 = vpack.c.bf16 %v233_v35, %v233_v35  ;;  %v629_v35 = vand.u32 127, %v253_v50 }
 0x169   :  { %376 = vmatmul.mubr.bf16.vlgmr.msra.gmra.mrb[0].mxu1 %v234_v37  ;;  %vm630_vm1 = vcmp.lt.s32.totalorder %v629_v35, 32 }
 0x16a   :  { %847 = vmatprep.mubr.msk.bf16.mxu1 %vm1148_vm0, %v1147_v0  ;;  %832 = vmatpush3.bf16.msra.mxu1 %v911_v44  ;;  %v763_v41 = vsel %vm630_vm1, 1.0, %v1147_v0  ;;  %v762_v44 = vsel %vm625_vm2, 1.0, %v1147_v0 }
 0x16b   :  { %833 = vmatprep.subr.bf16.mxu1 %v1147_v0 }
 0x16e   :  { %834 = vmatpush3.bf16.msra.mxu1 %v912_v45 }
 0x16f   :  { %835 = vmatprep.subr.bf16.mxu1 %v1147_v0 }
 0x172   :  { %836 = vmatpush3.bf16.msra.mxu1 %v913_v46 }
 0x173   :  { %837 = vmatprep.subr.bf16.mxu1 %v1147_v0 }
 0x176   :  { %838 = vmatpush3.bf16.msra.mxu1 %v914_v47 }
 0x177   :  { %839 = vmatprep.subr.bf16.mxu1 %v1147_v0 }
 0x17a   :  { %840 = vmatpush3.bf16.msra.mxu1 %v915_v48 }
 0x17b   :  { %841 = vmatprep.subr.bf16.mxu1 %v1147_v0 }
 0x17e   :  { %842 = vmatpush3.bf16.msra.mxu1 %v916_v49 }
 0x17f   :  { %843 = vmatprep.subr.bf16.mxu1 %v1147_v0 }
 0x182   :  { %844 = vmatpush3.bf16.msra.mxu1 %v917_v12 }
 0x183   :  { %845 = vmatprep.subr.bf16.mxu1 %v1147_v0 }
 0x186   :  { %846 = vmatpush3.bf16.msra.mxu1 %v918_v13 }
 0x23c   :  { %v377_v57 = vpop.f32.mrb[0].mxu1 }
 0x23d   :  { %v378_v58 = vadd.f32 %v377_v57, %v256_v55  ;;  %v379_v59 = vpop.f32.mrb[1].mxu1 }
 0x23e   :  { %v380_v60 = vadd.f32 %v379_v59, %v260_v56  ;;  %v381_v61 = vpop.f32.mrb[2].mxu1 }
 0x23f   :  { %v653_v62 = vmul.f32 %v378_v58, %v378_v58  ;;  %v382_v63 = vpop.f32.mrb[3].mxu1 }
 0x240   :  { %v384_v1 = vmul.f32 0.5, %v380_v60  ;;  %v652_v2 = vadd.f32 1.0, %v380_v60 }
 0x242   :  { %v385_v3 = vmul.f32 1.442695, %v384_v1  ;;  %v654_v4 = vsub.f32 %v652_v2, %v653_v62 }
 0x244   :  { %919 = vpow2.f32 %v385_v3 }
 0x24e   :  { %v920_v6 = vpop.eup %919 }
 0x24f   :  { %v387_v7 = vmul.f32 %v920_v6, %v120_v5  ;;  %v655_v8 = vmul.f32 %v920_v6, %v920_v6 }
 0x251   :  { %v388_v9 = vadd.f32 %v387_v7, %v378_v58  ;;  %v656_v10 = vsub.f32 %v654_v4, %v655_v8 }
 0x253   :  { %v389_v11 = vpack.c.bf16 %v388_v9, %v388_v9  ;;  %668 = vst [vmem:[#allocation13] sm:$0xff] %v388_v9  ;;  %v657_v46 = vmul.f32 -0.5, %v656_v10 }
 0x255   :  { %828 = vmatmul.mubr.bf16.vlgmr.msra.gmra.mrb[4].mxu0 %v389_v11  ;;  %v658_v47 = vmul.f32 %v762_v44, %v657_v46 }
 0x328   :  { %v495_v15 = vpop.f32.mrb[4].mxu0 }
 0x329   :  { %v496_v16 = vadd.f32 %v743_v14, %v495_v15  ;;  %v829_v17 = vpop.f32.mrb[5].mxu0 }
 0x32a   :  { %v498_v18 = vpop.f32.mrb[6].mxu0 }
 0x32b   :  { %v501_v19 = vmax.f32 %v496_v16, 0.0  ;;  %v830_v21 = vpop.f32.mrb[7].mxu0 }
 0x32d   :  { %v502_v22 = vpack.c.bf16 %v501_v19, %v501_v19 }
 0x32f   :  { %848 = vmatmul.mubr.bf16.vlgmr.msra.gmra.mrb[4].mxu1 %v502_v22 }
 0x402   :  { %v608_v24 = vpop.f32.mrb[4].mxu1 }
 0x403   :  { %v609_v25 = vadd.f32 %v752_v23, %v608_v24  ;;  %v849_v26 = vpop.f32.mrb[5].mxu1 }
 0x404   :  { %v611_v27 = vpop.f32.mrb[6].mxu1 }
 0x405   :  { %v761_v28 = vmul.f32 -1.442695, %v609_v25  ;;  %v850_v29 = vpop.f32.mrb[7].mxu1  ;;  %v633_v36 = vmax.f32 %v609_v25, 0.0  ;;  %v634_v37 = vmul.f32 %v609_v25, %v1329_v20 }
 0x407   :  { %921 = vpow2.f32 %v761_v28  ;;  %v635_v39 = vsub.f32 %v633_v36, %v634_v37 }
 0x411   :  { %v922_v30 = vpop.eup %921 }
 0x412   :  { %v617_v31 = vadd.f32 1.0, %v922_v30 }
 0x414   :  { %923 = vrcp.f32 %v617_v31 }
 0x41e   :  { %v924_v32 = vpop.eup %923 }
 0x41f   :  { %669 = vst [vmem:[#allocation14] sm:$0xff] %v924_v32  ;;  %v636_v33 = vsub.f32 1.0, %v924_v32 }
 0x421   :  { %v637_v34 = vmax.f32 %v924_v32, %v636_v33 }
 0x423   :  { %925 = vlog2.f32 %v637_v34 }
 0x42d   :  { %v926_v38 = vpop.eup %925 }
 0x42e   :  { %v639_v40 = vmul.f32 0.6931472, %v926_v38 }
 0x430   :  { %v640_v42 = vsub.f32 %v635_v39, %v639_v40 }
 0x432   :  { %v641_v43 = vmul.f32 %v763_v41, %v640_v42 }
 0x434   :  { %v642_v45 = vmul.f32 %v762_v44, %v641_v43 }
 0x436   :  { %643 = vadd.xlane.f32.xlu0 %v642_v45 }
 0x43a   :  { %659 = vadd.xlane.f32.xlu0 %v658_v47 }
 0x43b   :  { %1070 = shalt.err (!%p1067_p10)
}
 0x43c   :  { %s1071_s2 = scalar_lea.hbm %s1421_s11, 128 }
 0x43d   :  { %p1072_p11 = scmp.ne.s32.totalorder %s1421_s11, %s1071_s2  ;;  %p1075_p12 = scmp.lt.u32.totalorder %s1071_s2, %s1421_s11 }
 0x43f   :  { %p1077_p13 = pnand %p1075_p12, %p1072_p11 }
 0x441   :  { %1080 = shalt.err (!%p1077_p13)
}
 0x442   :  { %692 = dma.vmem_to_hbm [thread:$0]  %s690_s9, 128, %s1421_s11, [#allocation15]  }
 0x443   :  { %s1081_s15 = scalar_lea.vmem %s680_s23, 128  ;;  %p1086_p1 = scmp.lt.s32.totalorder %s680_s23, %s680_s23 }
 0x444   :  { %p1082_p0 = scmp.ne.s32.totalorder %s680_s23, %s1081_s15  ;;  %p1087_p2 = scmp.lt.s32.totalorder %s1081_s15, %s1081_s15 }
 0x446   :  { %p1088_p3 = por %p1087_p2, %p1086_p1 }
 0x448   :  { %p1089_p4 = pnand %p1088_p3, %p1082_p0 }
 0x44a   :  { %1092 = shalt.err (!%p1089_p4)
}
 0x44b   :  { %s1093_s19 = scalar_lea.hbm %s1420_s10, 128 }
 0x44c   :  { %p1094_p5 = scmp.ne.s32.totalorder %s1420_s10, %s1093_s19  ;;  %p1097_p6 = scmp.lt.u32.totalorder %s1093_s19, %s1420_s10 }
 0x44e   :  { %p1099_p7 = pnand %p1097_p6, %p1094_p5 }
 0x450   :  { %1102 = shalt.err (!%p1099_p7)
}
 0x451   :  { %682 = dma.vmem_to_hbm [thread:$0]  %s680_s23, 128, %s1420_s10, [#allocation4]  }
 0x452   :  { %s1152_s5 = smov [#allocation16]  }
 0x453   :  { %s699_s20 = sshll.u32 %s1152_s5, 4  ;;  %s700_s20 = int_to_ptr.vmem [resolvable:$true] %s699_s20 }
 0x454   :  { %s1103_s4 = scalar_lea.vmem %s700_s20, 128  ;;  %p1108_p9 = scmp.lt.s32.totalorder %s700_s20, %s700_s20 }
 0x455   :  { %p1104_p8 = scmp.ne.s32.totalorder %s700_s20, %s1103_s4  ;;  %p1109_p10 = scmp.lt.s32.totalorder %s1103_s4, %s1103_s4 }
 0x457   :  { %p1110_p11 = por %p1109_p10, %p1108_p9 }
 0x459   :  { %p1111_p12 = pnand %p1110_p11, %p1104_p8 }
 0x4c3   :  { %v644_v0 = vpop.xlane.xlu0 %643 }
 0x4c4   :  { %v645_v20 = vrot.slane %v644_v0, 4 }
 0x4c6   :  { %v646_v48 = vadd.f32 %v645_v20, %v644_v0 }
 0x4c7   :  { %v660_v49 = vpop.xlane.xlu0 %659 }
 0x4c8   :  { %v647_v50 = vrot.slane %v646_v48, 2  ;;  %v661_v51 = vrot.slane %v660_v49, 4 }
 0x4ca   :  { %v662_v52 = vadd.f32 %v661_v51, %v660_v49  ;;  %v648_v53 = vadd.f32 %v647_v50, %v646_v48 }
 0x4cc   :  { %v663_v54 = vrot.slane %v662_v52, 2  ;;  %v649_v55 = vrot.slane %v648_v53, 1 }
 0x4ce   :  { %v664_v56 = vadd.f32 %v663_v54, %v662_v52  ;;  %v650_v57 = vadd.f32 %v649_v55, %v648_v53 }
 0x4d0   :  { %851 = vpush %v650_v57  ;;  %v665_v58 = vrot.slane %v664_v56, 1 }
 0x4d2   :  { %v666_v59 = vadd.f32 %v665_v58, %v664_v56 }
 0x4d4   :  { %853 = vpush %v666_v59 }
 0x501   :  { %s852_s30 = spop %851 }
 0x505   :  { %s854_s10 = spop %853 }
 0x506   :  { %s670_s21 = sadd.f32 %s854_s10, %s852_s30 }
 0x508   :  { %v671_v60 = vstv %s670_s21 }
 0x509   :  { %672 = vst [vmem:[#allocation16] sm:$0xff] %v671_v60 }
 0x50a   :  { %1114 = shalt.err (!%p1111_p12)
}
 0x50b   :  { %s1115_s24 = scalar_lea.hbm %s1422_s12, 128 }
 0x50c   :  { %p1116_p13 = scmp.ne.s32.totalorder %s1422_s12, %s1115_s24  ;;  %p1119_p0 = scmp.lt.u32.totalorder %s1115_s24, %s1422_s12 }
 0x50e   :  { %p1121_p1 = pnand %p1119_p0, %p1116_p13 }
 0x510   :  { %1124 = shalt.err (!%p1121_p1)
}
 0x511   :  { %702 = dma.vmem_to_hbm [thread:$0]  %s700_s20, 128, %s1422_s12, [#allocation15]  }
 0x512   :  { %1133 = dma.done.wait [#allocation4], 128  }
 0x513   :  { %1134 = vsyncadd [#allocation4], 4294967168 }
 0x514   :  { %1135 = dma.done.wait [#allocation15], 256  }
 0x515   :  { %1136 = vsyncadd [#allocation15], 4294967040 }
 0x516   :  { %712 = vsyncpa [#allocation3], 1 }
 0x517   :  { %713 = vsyncpa [#allocation6], 1 }
 0x518   :  { %714 = vsyncpa [#allocation9], 1 }
 0x519   :  { %715 = vsyncpa [#allocation12], 1 }
 0x51a   :  { %716 = vsyncpa [#allocation4], 1 }
 0x51b   :  { %717 = vsyncpa [#allocation15], 1 }

</bundles_post_ra>
